<compile_context>
chip_gen: v6e
topology: v6e:2x2x1
jax: 0.10.0
libtpu: 0.0.40
codegen_flags: <defaults>
</compile_context>

<pallas_src>
import jax
import jax.numpy as jnp
from jax.experimental import pallas as pl
from jax.experimental.pallas import tpu as pltpu

_SMALL_FAST_PATH_BYTES = 256 * 1024  # below this, launch overhead > copy time


def graph_identity(x, *_, **__):
    """Faithful GraphIdentity.forward: a pure no-op (extra args ignored).

    Returning x is the optimal implementation: zero HBM traffic on every TPU
    generation.  Use `graph_identity_materialized` only if a fresh buffer
    (breaking aliasing) is explicitly required.
    """
    return x


def _dma_copy_kernel(x_hbm_ref, o_hbm_ref, sem):
    # Direct HBM -> HBM copy: one DMA, no VMEM round-trip, no (8,128) block
    # constraints, works for arbitrary shapes/dtypes, and saturates HBM
    # bandwidth on v5e / v6e / v7x.
    cp = pltpu.make_async_copy(x_hbm_ref, o_hbm_ref, sem)
    cp.start()
    cp.wait()


def graph_identity_materialized(x, *_, **__):
    """Returns a fresh buffer bit-identical to x (extra args ignored)."""
    if x.size == 0:
        return x

    nbytes = int(x.size) * jnp.dtype(x.dtype).itemsize
    if nbytes < _SMALL_FAST_PATH_BYTES:
        # KiB-scale tensors (typical GNN feature matrices): an XLA-native copy
        # avoids the fixed pallas_call launch/grid setup cost entirely while
        # preserving fresh-buffer semantics.
        return jnp.copy(x)

    # Large tensors: single full-array HBM->HBM DMA.  Both refs stay in HBM
    # (memory_space=pl.ANY); only a DMA-completion semaphore is allocated.
    return pl.pallas_call(
        _dma_copy_kernel,
        out_shape=jax.ShapeDtypeStruct(x.shape, x.dtype),
        in_specs=[pl.BlockSpec(memory_space=pl.ANY)],
        out_specs=pl.BlockSpec(memory_space=pl.ANY),
        scratch_shapes=[pltpu.SemaphoreType.DMA(())],
    )(x)


if __name__ == "__main__":
    key = jax.random.PRNGKey(0)
    k1, k2, k3 = jax.random.split(key, 3)

    # Small graph consistent with the module: 8 nodes, hidden = 32 (fast path).
    x_small = jax.random.normal(k1, (8, 32), dtype=jnp.float32)
    # Larger, aligned tensor (8 MiB) to exercise the direct-DMA path.
    x_big = jax.random.normal(k2, (8192, 256), dtype=jnp.float32)
    # Ragged shape above the fast-path threshold: DMA path, no pad / no trim.
    x_ragged = jax.random.normal(k3, (1037, 301), dtype=jnp.float32)

    # Production path: GraphIdentity is a no-op; extra args are ignored.
    y_small = graph_identity(x_small, None, edge_index=None)
    assert y_small is x_small

    # Materialized path: fresh buffers, bit-identical contents.
    z_small = jax.block_until_ready(graph_identity_materialized(x_small))
    z_big = jax.block_until_ready(graph_identity_materialized(x_big))
    z_ragged = jax.block_until_ready(graph_identity_materialized(x_ragged))

    assert z_small.shape == x_small.shape and z_small.dtype == x_small.dtype
    assert z_big.shape == x_big.shape and z_big.dtype == x_big.dtype
    assert z_ragged.shape == x_ragged.shape and z_ragged.dtype == x_ragged.dtype
    assert bool(jnp.all(z_small == x_small))
    assert bool(jnp.all(z_big == x_big))
    assert bool(jnp.all(z_ragged == x_ragged))
    print("KERNEL_OK")
</pallas_src>

<mosaic_0001>
module attributes {stable_mosaic.version = 11 : i64} {
  func.func @_dma_copy_kernel(%arg0: memref<8192x256xf32, #tpu.memory_space<any>>, %arg1: memref<8192x256xf32, #tpu.memory_space<any>>, %arg2: memref<!tpu.dma_semaphore, #tpu.memory_space<semaphore_mem>>) attributes {dimension_semantics = [], scalar_prefetch = 0 : i64, scratch_operands = 1 : i64, tpu.core_type = #tpu.core_type<tc>} {
    tpu.enqueue_dma source(%arg0 : memref<8192x256xf32, #tpu.memory_space<any>>) target(%arg1 : memref<8192x256xf32, #tpu.memory_space<any>>) target_semaphore(%arg2 : memref<!tpu.dma_semaphore, #tpu.memory_space<semaphore_mem>>)
    tpu.wait_dma2 semaphore(%arg2 : memref<!tpu.dma_semaphore, #tpu.memory_space<semaphore_mem>>) src(%arg0 : memref<8192x256xf32, #tpu.memory_space<any>>) dst(%arg1 : memref<8192x256xf32, #tpu.memory_space<any>>)
    return
  }
}

</mosaic_0001>

<bundles_post_ra>
// kernel: tpu_custom_call.1
= control target key start
LH: loop header
LB: loop body
LE: loop exit
PB: predicated region body
PF: predicated region fallthrough
CT: control target
= control target key end

     0   :  { %s29_s6 = smov [#allocation2]   ;;  %s30_s7 = smov 131072   ;;  %s48_s0 = inlined_call_operand.hbm [shape: f32[8192,256], index: 0, kind: input, shape index: {}]   ;;  %s49_s1 = inlined_call_operand.hbm [shape: f32[8192,256], index: 1, kind: output, shape index: {}]  }
   0x1   :  { %s31_s8 = smov 0  }
   0x2   :  { %12 = dma.general %s48_s0, 262144, %s49_s1, %s29_s6, %s30_s7, [#allocation4], %s31_s8, 0  }
   0x3   :  { %27 = dma.done.wait [#allocation2], 262144 }
   0x4   :  { %28 = vsyncadd [#allocation2], 4294705152 }
   0x5   :  { %17 = vsyncmov [#allocation2] }
   0x8   :  { %s18_s13 = vpop.sfrf %17 }
   0x9   :  { %p23_p0 = scmp.ne.s32.totalorder %s18_s13, 0 }
   0xb   :  { %22 = shalt.err (%p23_p0)  }

</bundles_post_ra>
